<compile_context>
chip_gen: v7x
topology: tpu7x:2x2x1
jax: 0.10.0
libtpu: 0.0.40
codegen_flags: <defaults>
</compile_context>

<pallas_src>
import functools

import jax
import jax.numpy as jnp
from jax import lax
from jax.experimental import pallas as pl
from jax.experimental.pallas import tpu as pltpu


def _round_up(x, m):
    return ((x + m - 1) // m) * m


def _vmem_capacity_bytes():
    """Per-TensorCore VMEM capacity; conservative fallback = v7x (64 MiB)."""
    try:
        info = pltpu.get_tpu_info()
        cap = getattr(info, "vmem_capacity_bytes", None)
        if cap:
            return int(cap)
    except Exception:
        pass
    return 64 * 1024 * 1024


def _ordinal_bce_kernel(logits_ref, targets_ref, out_ref, *, alpha, threshold,
                        total_rows, block_rows, tiles_per_part, needs_mask,
                        approx_sigmoid):
    """Per-tile loss; accumulates a (1, N) column-sum row into out_ref.

    out_ref's block index is constant along the inner (reduction) grid axis,
    so it stays resident in VMEM and acts as the accumulator (P3 pattern).
    """
    p = pl.program_id(0)
    i = pl.program_id(1)

    @pl.when(i == 0)
    def _init():
        out_ref[...] = jnp.zeros_like(out_ref)

    # Cast in-kernel; inputs travel HBM->VMEM in their native dtypes.
    x = logits_ref[...].astype(jnp.float32)          # (TM, N)
    t = targets_ref[...].astype(jnp.float32)         # labels 0..4

    # binary_targets table [1 if k > threshold else 0][t] == (t > threshold).
    z = (t > threshold).astype(jnp.float32)

    # Shared transcendental: e = exp(-|x|) feeds both softplus and sigmoid.
    e = jnp.exp(-jnp.abs(x))

    # Stable softplus term log1p(e): for e < 1e-6, log(1+e) ~= e (avoids the
    # 1+e == 1 underflow) -- no dependence on a log1p lowering.
    softplus = jnp.where(e < 1e-6, e, jnp.log(1.0 + e))

    # Numerically stable BCE-with-logits (pos_weight=None):
    bce = jnp.maximum(x, 0.0) - x * z + softplus

    # sigmoid(x) from the same e; approx=True -> EUP vrcp (VALU has no slack).
    r = pl.reciprocal(1.0 + e, approx=approx_sigmoid)
    prob = jnp.where(x >= 0.0, r, e * r)

    d = prob - t * 0.25                              # sigmoid(x) - targets/4
    loss = bce + alpha * (d * d)

    if needs_mask:
        # Zero out pad rows of partial tiles and phantom tiles introduced by
        # balancing the 2-way parallel split (select, so garbage/NaN padding
        # cannot poison the sum).
        row0 = (p * tiles_per_part + i) * block_rows
        rows = row0 + lax.broadcasted_iota(jnp.int32, loss.shape, 0)
        loss = jnp.where(rows < total_rows, loss, 0.0)

    # Per-tile sublane sum -> running (1, N) row for this part.
    out_ref[...] += jnp.sum(loss, axis=0, keepdims=True)


def ordinal_bce_loss(logits, targets, *, alpha=0.5, threshold=2,
                     reduction="mean", block_rows=None, approx_sigmoid=True):
    """Pallas TPU implementation of OrdinalBCELoss.forward ('mean'/'sum')."""
    assert logits.shape == targets.shape and logits.ndim == 2
    M, N = logits.shape

    # Per-generation VMEM budgeting: ~40% of physical for the double-buffered
    # input tiles, scoped limit raised to ~60% so big tiles are admitted.
    vmem_cap = _vmem_capacity_bytes()
    itemsize_sum = logits.dtype.itemsize + targets.dtype.itemsize
    input_budget = (2 * vmem_cap) // 5
    vmem_limit = min((3 * vmem_cap) // 5, 112 * 1024 * 1024)

    if block_rows is None:
        max_rows = max(8, input_budget // (2 * N * itemsize_sum))
        cap = min(1024, _round_up(M, 8))
        block_rows = 8
        while block_rows * 2 <= min(max_rows, cap):
            block_rows *= 2
    assert block_rows % 8 == 0, "block_rows must be a multiple of 8"

    n_blocks = -(-M // block_rows)                 # blocks actually in the arrays
    # Always give v7x's two TensorCores a balanced split when there is >1 tile;
    # phantom tiles (beyond n_blocks) are clamped in the index_map and masked.
    num_parts = 2 if n_blocks >= 2 else 1
    tiles_per_part = -(-n_blocks // num_parts)
    covered_rows = num_parts * tiles_per_part * block_rows
    needs_mask = covered_rows != M

    kernel = functools.partial(
        _ordinal_bce_kernel,
        alpha=float(alpha), threshold=float(threshold),
        total_rows=M, block_rows=block_rows, tiles_per_part=tiles_per_part,
        needs_mask=needs_mask, approx_sigmoid=approx_sigmoid)

    last_block = n_blocks - 1

    def in_map(p, i):
        return (jnp.minimum(p * tiles_per_part + i, last_block), 0)

    cost = pl.CostEstimate(
        flops=15 * M * N,
        transcendentals=2 * M * N,
        bytes_accessed=M * N * itemsize_sum + num_parts * N * 4,
    )

    partial_rows = pl.pallas_call(
        kernel,
        out_shape=jax.ShapeDtypeStruct((num_parts, 1, N), jnp.float32),
        grid=(num_parts, tiles_per_part),
        in_specs=[
            pl.BlockSpec((block_rows, N), in_map),   # logits (native dtype)
            pl.BlockSpec((block_rows, N), in_map),   # targets (native dtype)
        ],
        # Leading dim squeezed; block index constant along i -> resident acc.
        out_specs=pl.BlockSpec((None, 1, N), lambda p, i: (p, 0, 0)),
        compiler_params=pltpu.CompilerParams(
            dimension_semantics=("parallel", "arbitrary"),
            vmem_limit_bytes=int(vmem_limit),
        ),
        cost_estimate=cost,
    )(logits, targets)

    total = jnp.sum(partial_rows)          # tiny finalize reduce (num_parts x N)
    if reduction == "sum":
        return total
    return total * jnp.float32(1.0 / (M * N))        # 'mean'


def _reference(logits, targets, *, alpha=0.5, threshold=2):
    """Pure-JAX reference mirroring the PyTorch module."""
    table = jnp.array([1.0 if i > threshold else 0.0 for i in range(5)],
                      jnp.float32)
    z = table[targets.astype(jnp.int32)]
    x = logits.astype(jnp.float32)
    bce = jnp.maximum(x, 0.0) - x * z + jnp.log1p(jnp.exp(-jnp.abs(x)))
    p = jax.nn.sigmoid(x)
    penalty = (p - targets.astype(jnp.float32) / 4.0) ** 2
    return jnp.mean(bce + alpha * penalty)


if __name__ == "__main__":
    key = jax.random.PRNGKey(0)
    k1, k2, k3, k4 = jax.random.split(key, 4)

    # Case 1: even fit. block_rows=32 -> 4 row tiles, balanced 2-way parallel
    # split x 2 reduction steps; exercises init / accumulate / finalize.
    M, N = 128, 256
    logits = jax.random.normal(k1, (M, N), dtype=jnp.float32) * 2.0
    targets = jax.random.randint(k2, (M, N), 0, 5, dtype=jnp.int32)
    loss = jax.block_until_ready(ordinal_bce_loss(logits, targets,
                                                  block_rows=32))
    ref = jax.block_until_ready(_reference(logits, targets))
    assert jnp.allclose(loss, ref, rtol=2e-3, atol=1e-5), (loss, ref)

    # Case 2: ragged M (not a multiple of 8 or of the auto tile) with the
    # budget-aware default block_rows; exercises the clamped index_map,
    # in-kernel row mask, and unbiased mean.
    M2 = 100
    logits2 = jax.random.normal(k3, (M2, N), dtype=jnp.float32) * 2.0
    targets2 = jax.random.randint(k4, (M2, N), 0, 5, dtype=jnp.int32)
    loss2 = jax.block_until_ready(ordinal_bce_loss(logits2, targets2))
    ref2 = jax.block_until_ready(_reference(logits2, targets2))
    assert jnp.allclose(loss2, ref2, rtol=2e-3, atol=1e-5), (loss2, ref2)

    print("KERNEL_OK")
</pallas_src>

<mosaic_0001>
module attributes {stable_mosaic.version = 11 : i64} {
  func.func @_ordinal_bce_kernel(%arg0: i32, %arg1: i32, %arg2: memref<32x256xf32, #tpu.memory_space<vmem>>, %arg3: memref<32x256xi32, #tpu.memory_space<vmem>>, %arg4: memref<1x1x256xf32, #tpu.memory_space<vmem>>) attributes {dimension_semantics = [#tpu.dimension_semantics<parallel>, #tpu.dimension_semantics<arbitrary>], iteration_bounds = array<i64: 2, 2>, scalar_prefetch = 0 : i64, scratch_operands = 0 : i64, tpu.core_type = #tpu.core_type<tc>, window_params = [{transform_indices = @transform_0, window_bounds = array<i64: 32, 256>}, {transform_indices = @transform_1, window_bounds = array<i64: 32, 256>}, {transform_indices = @transform_2, window_bounds = array<i64: 1, 1, 256>}]} {
    %c0_i32 = arith.constant 0 : i32
    %0 = arith.cmpi eq, %arg1, %c0_i32 : i32
    %1 = arith.extui %0 : i1 to i32
    %c0_i32_0 = arith.constant 0 : i32
    %2 = arith.cmpi ne, %1, %c0_i32_0 : i32
    scf.if %2 {
      %cst_19 = arith.constant 0.000000e+00 : f32
      %47 = vector.broadcast %cst_19 : f32 to vector<1x256xf32>
      %c0_20 = arith.constant 0 : index
      %c0_21 = arith.constant 0 : index
      %c0_22 = arith.constant 0 : index
      %48 = vector.load %arg4[%c0_20, %c0_21, %c0_22] : memref<1x1x256xf32, #tpu.memory_space<vmem>>, vector<1x1x256xf32>
      %49 = vector.shape_cast %48 : vector<1x1x256xf32> to vector<1x256xf32>
      %50 = vector.shape_cast %47 : vector<1x256xf32> to vector<1x1x256xf32>
      tpu.vector_store %arg4[%c0_20, %c0_21, %c0_22], %50 {strides = array<i32>} : memref<1x1x256xf32, #tpu.memory_space<vmem>>, vector<1x1x256xf32>,
    } else {
    }
    %c0 = arith.constant 0 : index
    %c0_1 = arith.constant 0 : index
    %3 = vector.load %arg2[%c0, %c0_1] : memref<32x256xf32, #tpu.memory_space<vmem>>, vector<32x256xf32>
    %c0_2 = arith.constant 0 : index
    %c0_3 = arith.constant 0 : index
    %4 = vector.load %arg3[%c0_2, %c0_3] : memref<32x256xi32, #tpu.memory_space<vmem>>, vector<32x256xi32>
    %5 = arith.sitofp %4 : vector<32x256xi32> to vector<32x256xf32>
    %cst = arith.constant 2.000000e+00 : f32
    %6 = vector.broadcast %cst : f32 to vector<32x256xf32>
    %7 = arith.cmpf ogt, %5, %6 : vector<32x256xf32>
    %8 = arith.extui %7 : vector<32x256xi1> to vector<32x256xi32>
    %9 = arith.sitofp %8 : vector<32x256xi32> to vector<32x256xf32>
    %10 = math.absf %3 : vector<32x256xf32>
    %cst_4 = arith.constant 0.000000e+00 : f32
    %11 = vector.broadcast %cst_4 : f32 to vector<32x256xf32>
    %12 = arith.subf %11, %10 : vector<32x256xf32>
    %13 = math.exp %12 : vector<32x256xf32>
    %cst_5 = arith.constant 9.99999997E-7 : f32
    %14 = vector.broadcast %cst_5 : f32 to vector<32x256xf32>
    %15 = arith.cmpf olt, %13, %14 : vector<32x256xf32>
    %cst_6 = arith.constant 1.000000e+00 : f32
    %16 = vector.broadcast %cst_6 : f32 to vector<32x256xf32>
    %17 = arith.addf %16, %13 : vector<32x256xf32>
    %18 = math.log %17 : vector<32x256xf32>
    %19 = arith.select %15, %13, %18 : vector<32x256xi1>, vector<32x256xf32>
    %cst_7 = arith.constant 0.000000e+00 : f32
    %20 = vector.broadcast %cst_7 : f32 to vector<32x256xf32>
    %21 = arith.maximumf %3, %20 : vector<32x256xf32>
    %22 = arith.mulf %3, %9 : vector<32x256xf32>
    %23 = arith.subf %21, %22 : vector<32x256xf32>
    %24 = arith.addf %23, %19 : vector<32x256xf32>
    %cst_8 = arith.constant 1.000000e+00 : f32
    %25 = vector.broadcast %cst_8 : f32 to vector<32x256xf32>
    %26 = arith.addf %25, %13 : vector<32x256xf32>
    %27 = tpu.reciprocal %26 {approx = true} : vector<32x256xf32> -> vector<32x256xf32>
    %cst_9 = arith.constant 0.000000e+00 : f32
    %28 = vector.broadcast %cst_9 : f32 to vector<32x256xf32>
    %29 = arith.cmpf oge, %3, %28 : vector<32x256xf32>
    %30 = arith.mulf %13, %27 : vector<32x256xf32>
    %31 = arith.select %29, %27, %30 : vector<32x256xi1>, vector<32x256xf32>
    %cst_10 = arith.constant 2.500000e-01 : f32
    %32 = vector.broadcast %cst_10 : f32 to vector<32x256xf32>
    %33 = arith.mulf %5, %32 : vector<32x256xf32>
    %34 = arith.subf %31, %33 : vector<32x256xf32>
    %35 = arith.mulf %34, %34 : vector<32x256xf32>
    %cst_11 = arith.constant 5.000000e-01 : f32
    %36 = vector.broadcast %cst_11 : f32 to vector<32x256xf32>
    %37 = arith.mulf %36, %35 : vector<32x256xf32>
    %38 = arith.addf %24, %37 : vector<32x256xf32>
    %c0_12 = arith.constant 0 : index
    %c0_13 = arith.constant 0 : index
    %c0_14 = arith.constant 0 : index
    %39 = vector.load %arg4[%c0_12, %c0_13, %c0_14] : memref<1x1x256xf32, #tpu.memory_space<vmem>>, vector<1x1x256xf32>
    %40 = vector.shape_cast %39 : vector<1x1x256xf32> to vector<1x256xf32>
    %cst_15 = arith.constant dense<0.000000e+00> : vector<256xf32>
    %41 = vector.multi_reduction <add>, %38, %cst_15 [0] : vector<32x256xf32> to vector<256xf32>
    %42 = vector.shape_cast %41 : vector<256xf32> to vector<1x256xf32>
    %43 = arith.addf %40, %42 : vector<1x256xf32>
    %c0_16 = arith.constant 0 : index
    %c0_17 = arith.constant 0 : index
    %c0_18 = arith.constant 0 : index
    %44 = vector.load %arg4[%c0_16, %c0_17, %c0_18] : memref<1x1x256xf32, #tpu.memory_space<vmem>>, vector<1x1x256xf32>
    %45 = vector.shape_cast %44 : vector<1x1x256xf32> to vector<1x256xf32>
    %46 = vector.shape_cast %43 : vector<1x256xf32> to vector<1x1x256xf32>
    tpu.vector_store %arg4[%c0_16, %c0_17, %c0_18], %46 {strides = array<i32>} : memref<1x1x256xf32, #tpu.memory_space<vmem>>, vector<1x1x256xf32>,
    return
  }
  func.func @transform_0(%arg0: i32, %arg1: i32) -> (i32, i32) {
    %c2_i32 = arith.constant 2 : i32
    %0 = arith.muli %arg0, %c2_i32 : i32
    %1 = arith.addi %0, %arg1 : i32
    %c3_i32 = arith.constant 3 : i32
    %2 = arith.minsi %1, %c3_i32 : i32
    %c0_i32 = arith.constant 0 : i32
    %c0_i32_0 = arith.constant 0 : i32
    return %2, %c0_i32 : i32, i32
  }
  func.func @transform_1(%arg0: i32, %arg1: i32) -> (i32, i32) {
    %c2_i32 = arith.constant 2 : i32
    %0 = arith.muli %arg0, %c2_i32 : i32
    %1 = arith.addi %0, %arg1 : i32
    %c3_i32 = arith.constant 3 : i32
    %2 = arith.minsi %1, %c3_i32 : i32
    %c0_i32 = arith.constant 0 : i32
    %c0_i32_0 = arith.constant 0 : i32
    return %2, %c0_i32 : i32, i32
  }
  func.func @transform_2(%arg0: i32, %arg1: i32) -> (i32, i32, i32) {
    %c0_i32 = arith.constant 0 : i32
    %c0_i32_0 = arith.constant 0 : i32
    %c0_i32_1 = arith.constant 0 : i32
    return %arg0, %c0_i32, %c0_i32_0 : i32, i32, i32
  }
}

</mosaic_0001>

<bundles_post_ra>
// kernel: tpu_custom_call.1
= control target key start
LH: loop header
LB: loop body
LE: loop exit
PB: predicated region body
PF: predicated region fallthrough
CT: control target
= control target key end

     0   :  { %s1597_s0 = inlined_call_operand.hbm [shape: f32[128,256], index: 0, kind: input, shape index: {}]   ;;  %s1598_s1 = inlined_call_operand.hbm [shape: s32[128,256], index: 1, kind: input, shape index: {}]   ;;  %s1599_s2 = inlined_call_operand.hbm [shape: f32[2,1,256], index: 2, kind: output, shape index: {}]  }
   0x1   :  { %1609 = sst [smem:[#allocation15_spill]] %s1597_s0 }
   0x2   :  { %7 = vsyncpa [#allocation3], 0 }
   0x3   :  { %9 = vsyncpa [#allocation3 + $0x1], 0 }
   0x4   :  { %10 = vsyncpa [#allocation6], 0 }
   0x5   :  { %12 = vsyncpa [#allocation6 + $0x1], 0 }
   0x6   :  { %13 = vsyncpa [#allocation4], 0 }
   0x7   :  { %15 = vsyncpa [#allocation4 + $0x1], 0  ;;  %s1057_s9 = smov 0   ;;  %s1059_s10 = smov 0  }
   0x8   :  { %s1061_s11 = smov 0   ;;  %s1063_s12 = smov 0  }
   0x9   :  { %s1065_s13 = smov 0   ;;  %s1067_s14 = smov 0  }
   0xa   :  { %s1069_s15 = smov 0   ;;  %s1071_s16 = smov 0  }
   0xb   :  { %s1073_s17 = smov 0   ;;  %s1075_s18 = smov 0  }
   0xc   :  { %s1077_s19 = smov 0  }
   0xd LB: > { %1610 = sst [smem:[#allocation11_spill]] %s1024_s17  ;;  %s645_s20 = sadd.s32 4294967295, %s1032_s19   ;;  %s1032_s19 = sphi %s1077_s19, %s21_s19   ;;  %s1028_s18 = sphi %s1075_s18, %s1631_s18   ;;  %s1024_s17 = sphi %s1073_s17, %s1630_s17   ;;  %s1020_s16 = sphi %s1071_s16, %s1629_s16   ;;  %s1016_s15 = sphi %s1069_s15, %s1628_s15   ;;  %s1012_s14 = sphi %s1067_s14, %s1637_s14   ;;  %s1008_s13 = sphi %s1065_s13, %s1636_s13   ;;  %s1004_s12 = sphi %s1063_s12, %s1635_s12   ;;  %s1000_s11 = sphi %s1061_s11, %s1634_s11   ;;  %s996_s10 = sphi %s1059_s10, %s1633_s10   ;;  %s992_s9 = sphi %s1057_s9, %s1632_s9  }
   0xe   : > { %1611 = sst [smem:[#allocation12_spill]] %s1028_s18  ;;  %s646_s21 = sadd.s32 4294967294, %s1032_s19  }
   0xf   : > { %s30_s22 = sadd.s32 1, %s1024_s17  ;;  %s33_s23 = sadd.s32 1, %s1028_s18 }
  0x10   : > { %p31_p0 = scmp.ge.s32.totalorder %s30_s22, 2  ;;  %s647_s24 = sshll.u32 %s1028_s18, 1 }
  0x11   : > { %s38_s25 = sadd.s32 %s1024_s17, %s647_s24  ;;  %s48_s26 = sadd.s32 1, %s1012_s14 }
  0x12   : > { %s1639_s22 = smov (%p31_p0, %s30_s22), 0  ;;  %s1641_s23 = smov (!%p31_p0, %s33_s23), %s1028_s18 }
  0x13   : > { %1612 = sst [smem:[#allocation13_spill]] %s1639_s22  ;;  %p39_p1 = scmp.lt.s32.totalorder %s38_s25, 3 }
  0x14   : > { %p55_p2 = scmp.ne.s32.totalorder %s1012_s14, %s1008_s13  ;;  %p35_p3 = scmp.ge.s32.totalorder %s1641_s23, 2 }
  0x15   : > { %p56_p4 = scmp.eq.s32.totalorder %s1032_s19, 0  ;;  %s1643_s25 = smov (!%p39_p1, %s38_s25), 3 }
  0x16   : > { %s1645_s23 = smov (%p35_p3, %s1641_s23), 0  ;;  %p61_p6 = scmp.ne.s32.totalorder %s1008_s13, %s1004_s12 }
  0x17   : > { %1613 = sst [smem:[#allocation14_spill]] %s1645_s23  ;;  %p1129_p5 = por %p56_p4, %p55_p2 }
  0x18   : > { %s648_s28 = sshll.u32 %s1645_s23, 1  ;;  %p62_p7 = scmp.eq.s32.totalorder %s645_s20, 0 }
  0x19   : > { %s42_s29 = sadd.s32 %s648_s28, %s1639_s22  ;;  %s105_s30 = ssub.s32 %s1028_s18, %s1645_s23 }
  0x1a   : > { %p43_p8 = scmp.lt.s32.totalorder %s42_s29, 3  ;;  %p1141_p9 = por %p62_p7, %p61_p6 }
  0x1b   : > { %p106_p10 = scmp.eq.s32.totalorder %s105_s30, 0  ;;  %s108_s4 = sadd.s32 1, %s1000_s11 }
  0x1c   : > { %s1615_s3 = scalar_select %p1141_p9, 1, 0 }
  0x1d   : > { %s1647_s29 = smov (!%p43_p8, %s42_s29), 3  ;;  %p118_p11 = scmp.ne.s32.totalorder %s1000_s11, %s996_s10 }
  0x1e   : > { %s1147_s5 = scalar_select %p106_p10, %s1000_s11, %s108_s4  }
  0x1f   : > { %s45_s6 = ssub.s32 %s1643_s25, %s1647_s29  ;;  %p119_p13 = scmp.eq.s32.totalorder %s645_s20, 3 }
  0x20   : > { %p46_p12 = scmp.eq.s32.totalorder %s45_s6, 0  ;;  %p124_p0 = scmp.ne.s32.totalorder %s996_s10, %s992_s9 }
  0x21   : > { %p125_p1 = scmp.eq.s32.totalorder %s646_s21, 3  ;;  %p1161_p2 = por %p119_p13, %p118_p11 }
  0x22   : > { %s1159_s7 = scalar_select %p46_p12, %s1012_s14, %s48_s26  }
  0x23   : > { %s1616_s8 = scalar_select %p1161_p2, 1, 0 }
  0x24   : > { %p1165_p3 = por %p125_p1, %p124_p0  ;;  %p703_p4 = scmp.lt.s32.totalorder %s1032_s19, 4 }
  0x25   : > { %s1171_s24 = sand.u32 1, %s1012_s14   ;;  %s1602_s20 = sshll.u32 %s1643_s25, 10 }
  0x26   : > { %s1617_s12 = scalar_select %p1165_p3, 1, 0 }
  0x27   : > { %s1601_s28 = sshll.u32 %s1171_s24, 6  ;;  %s1618_s0 = sld [smem:[#allocation15_spill]] }
  0x28   : > { %s149_s30 = scalar_lea.vmem [#allocation2], %s1601_s28  ;;  %p1186_p6 = pnand %p703_p4, %p1129_p5 }
  0x29   : > { %s161_s4 = sshll.u32 %s149_s30, 4  ;;  %s1190_s4 = int_to_ptr.vmem [resolvable:$true] %s161_s4 }
  0x2a   : > { %p848_p8 = pneg %p1186_p6 }
  0x2d   : > { %s1180_s29 = scalar_lea.hbm %s1618_s0, %s1602_s20  ;;  %s851_s27 = scalar_lea.hbm %s1618_s0, 4096 }
  0x2e   : > { %s846_s21 = scalar_lea.hbm %s1180_s29, 1024  ;;  %p852_p5 = scmp.lt.u32.totalorder %s1180_s29, %s1618_s0 }
  0x2f   : > { %p847_p7 = scmp.ne.s32.totalorder %s1180_s29, %s846_s21  ;;  %p853_p12 = scmp.lt.u32.totalorder %s851_s27, %s846_s21 }
  0x30   : > { %p855_p0 = scmp.lt.u32.totalorder %s846_s21, %s1180_s29 }
  0x31   : > { %p849_p10 = pnand %p848_p8, %p847_p7  ;;  %p854_p13 = por %p853_p12, %p852_p5 }
  0x33   : > { %p850_p11 = pneg %p849_p10  ;;  %p856_p1 = por %p855_p0, %p854_p13 }
  0x35   : > { %p857_p4 = pnand %p856_p1, %p850_p11 }
  0x37   : > { %860 = shalt.err (!%p857_p4)
}
  0x38   : > { %s861_s23 = scalar_lea.vmem %s1190_s4, 1024  ;;  %s1034_s26 = smov [#allocation2]  }
  0x39   : > { %p862_p7 = scmp.ne.s32.totalorder %s1190_s4, %s861_s23  ;;  %s866_s30 = sshll.u32 %s1034_s26, 4  ;;  %s867_s30 = int_to_ptr.vmem [resolvable:$false] %s866_s30 }
  0x3a   : > { %s868_s20 = scalar_lea.vmem %s867_s30, 2048  ;;  %p869_p2 = scmp.lt.s32.totalorder %s1190_s4, %s867_s30 }
  0x3b   : > { %p864_p10 = pnand %p862_p7, %p848_p8  ;;  %p870_p5 = scmp.lt.s32.totalorder %s868_s20, %s861_s23 }
  0x3d   : > { %p865_p3 = pneg %p864_p10  ;;  %p871_p12 = por %p870_p5, %p869_p2 }
  0x3f   : > { %p872_p13 = pnand %p871_p12, %p865_p3 }
  0x41   : > { %875 = shalt.err (!%p872_p13)
}
  0x42   : > { %s1035_s28 = smov 256   ;;  %s1036_s21 = smov 16  }
  0x43   : > { %s1620_s23 = scalar_lea.sflag [#allocation3], %s1171_s24  ;;  %p663_p2 = scmp.ge.s32.totalorder %s1032_s19, 1 }
  0x44   : > { %695 = dma.hbm_to_vmem [thread:$0]  (!%p1186_p6), %s1180_s29, 1024, %s1190_s4, %s1620_s23, %s1035_s28, %s1035_s28, %s1036_s21  }
  0x45   : > { %p195_p3 = scmp.lt.s32.totalorder %s1032_s19, 5  ;;  %s1622_s26 = sshll.u32 %s1643_s25, 10 }
  0x46   : > { %s1234_s0 = scalar_lea.hbm %s1598_s1, %s1622_s26  ;;  %s1623_s22 = sshll.u32 %s1171_s24, 6 }
  0x47   : > { %p1225_p11 = pnand %p663_p2, %p195_p3  ;;  %s175_s18 = scalar_lea.vmem [#allocation5], %s1623_s22 }
  0x48   : > { %s187_s17 = sshll.u32 %s175_s18, 4  ;;  %s172_s29 = scalar_lea.sflag [#allocation6], %s1171_s24  ;;  %s1238_s17 = int_to_ptr.vmem [resolvable:$true] %s187_s17 }
  0x49   : > { %s876_s4 = scalar_lea.hbm %s1234_s0, 1024  ;;  %s881_s26 = scalar_lea.hbm %s1598_s1, 4096 }
  0x4a   : > { %p877_p0 = scmp.ne.s32.totalorder %s1234_s0, %s876_s4  ;;  %p882_p7 = scmp.lt.u32.totalorder %s1234_s0, %s1598_s1 }
  0x4b   : > { %p883_p10 = scmp.lt.u32.totalorder %s881_s26, %s876_s4  ;;  %p885_p12 = scmp.lt.u32.totalorder %s876_s4, %s1234_s0 }
  0x4c   : > { %p879_p1 = pnand %p877_p0, %p848_p8 }
  0x4d   : > { %p884_p5 = por %p883_p10, %p882_p7 }
  0x4e   : > { %p880_p4 = pneg %p879_p1 }
  0x4f   : > { %p886_p13 = por %p885_p12, %p884_p5 }
  0x51   : > { %p887_p2 = pnand %p886_p13, %p880_p4 }
  0x53   : > { %890 = shalt.err (!%p887_p2)
}
  0x54   : > { %s891_s18 = scalar_lea.vmem %s1238_s17, 1024  ;;  %s1037_s22 = smov [#allocation5]  }
  0x55   : > { %p892_p3 = scmp.ne.s32.totalorder %s1238_s17, %s891_s18  ;;  %s896_s25 = sshll.u32 %s1037_s22, 4  ;;  %s897_s25 = int_to_ptr.vmem [resolvable:$false] %s896_s25 }
  0x56   : > { %s898_s23 = scalar_lea.vmem %s897_s25, 2048  ;;  %p899_p9 = scmp.lt.s32.totalorder %s1238_s17, %s897_s25 }
  0x57   : > { %p894_p0 = pnand %p892_p3, %p848_p8  ;;  %p900_p7 = scmp.lt.s32.totalorder %s898_s23, %s891_s18 }
  0x59   : > { %p895_p1 = pneg %p894_p0  ;;  %p901_p10 = por %p900_p7, %p899_p9 }
  0x5b   : > { %p902_p5 = pnand %p901_p10, %p895_p1 }
  0x5d   : > { %905 = shalt.err (!%p902_p5)
}
  0x5e   : > { %698 = dma.hbm_to_vmem [thread:$0]  (!%p1186_p6), %s1234_s0, 1024, %s1238_s17, %s172_s29, %s1035_s28, %s1035_s28, %s1036_s21  }
  0x5f   : > { %199 = sbr.rel (%p1225_p11) target bundleno = 208 (0xd0), region = 28  ;;  %s201_s4 = sand.u32 (!%p1225_p11), 1, %s1008_s13  }
  0x60   : > { %s664_s26 = sshll.u32 (!%p1225_p11), %s201_s4, 6  ;;  %s202_s30 = scalar_lea.sflag (!%p1225_p11), [#allocation3], %s201_s4 }
  0x61   : > { %s205_s20 = scalar_lea.vmem (!%p1225_p11), [#allocation2], %s664_s26  ;;  %p1624_p9 = scmp.ne.s32.totalorder (!%p1225_p11), %s1615_s3, 0 }
  0x66   : > { %979 = dma.done.wait (%p1624_p9), %s202_s30, 1024  }
  0x67   : > { %981 = vsyncadd (%p1624_p9), %s202_s30, 4294966272  ;;  %s211_s6 = scalar_lea.sflag [#allocation6], %s201_s4  ;;  %s1276_s24 = scalar_lea.vmem [#allocation5], %s664_s26 }
  0x68   : > { %983 = dma.done.wait (%p1624_p9), %s211_s6, 1024  }
  0x69   : > { %985 = vsyncadd (%p1624_p9), %s211_s6, 4294966272  ;;  %s237_s0 = sand.u32 1, %s996_s10   ;;  %p667_p6 = scmp.ne.s32.totalorder %s1016_s15, 0 }
  0x6a   : > { %s666_s17 = sshll.u32 %s237_s0, 1  ;;  %v254_v0 = vlaneseq (!%p667_p6)  ;;  %v1038_v1 = vmov (!%p667_p6), 0.0  }
  0x6b   : > { %s1285_s28 = scalar_lea.vmem [#allocation7], %s666_s17  ;;  %253 = sbr.rel (%p667_p6) target bundleno = 114 (0x72), region = 40 }
  0x6c   : > { %vm256_vm0 = vcmp.lt.s32.totalorder (!%p667_p6), %v254_v0, 256 }
  0x6d   : > { %258 = vst.msk [vmem:[%s1285_s28] sm:$0x3] (!%p667_p6), %vm256_vm0, %v1038_v1 }
  0x72 PF: > { %v1289_v2 = vld [vmem:[%s205_s20] sm:$0xff]  ;;  %v1291_v3 = vld [vmem:[%s205_s20 + $0x8] sm:$0xff]  ;;  %v1293_v4 = vld [vmem:[%s205_s20 + $0x10] sm:$0xff]  ;;  %v1039_v50 = vmov 0.0   ;;  %s685_s15 = sshll.u32 %s1020_s16, 5  ;;  %s541_s3 = sshll.u32 %s1285_s28, 4  ;;  %s1534_s3 = int_to_ptr.vmem [resolvable:$true] %s541_s3 }
  0x73   : > { %v1295_v5 = vld [vmem:[%s205_s20 + $0x18] sm:$0xff]  ;;  %v307_v6 = vand.u32 2147483647, %v1289_v2  ;;  %v1298_v7 = vld [vmem:[%s205_s20 + $0x20] sm:$0xff]  ;;  %v1300_v8 = vld [vmem:[%s205_s20 + $0x28] sm:$0xff]  ;;  %v379_v52 = vmax.f32 %v1289_v2, 0.0  ;;  %s1532_s29 = scalar_lea.hbm %s1599_s2, %s685_s15 }
  0x74   : > { %v1302_v9 = vld [vmem:[%s205_s20 + $0x30] sm:$0xff]  ;;  %v308_v10 = vand.u32 2147483647, %v1291_v3  ;;  %v309_v11 = vand.u32 2147483647, %v1293_v4  ;;  %v1307_v13 = vld [vmem:[%s205_s20 + $0x38] sm:$0xff] }
  0x75   : > { %v310_v12 = vand.u32 2147483647, %v1295_v5  ;;  %v315_v14 = vsub.f32 0.0, %v307_v6  ;;  %v311_v15 = vand.u32 2147483647, %v1298_v7  ;;  %v1314_v22 = vld [vmem:[%s1276_s24] sm:$0xff] }
  0x76   : > { %v312_v16 = vand.u32 2147483647, %v1300_v8  ;;  %v313_v17 = vand.u32 2147483647, %v1302_v9  ;;  %v314_v18 = vand.u32 2147483647, %v1307_v13  ;;  %v275_v40 = vcvt.s32.f32 %v1314_v22 }
  0x77   : > { %v316_v19 = vsub.f32 0.0, %v308_v10  ;;  %v317_v20 = vsub.f32 0.0, %v309_v11  ;;  %v318_v21 = vsub.f32 0.0, %v310_v12  ;;  %v319_v23 = vsub.f32 0.0, %v311_v15  ;;  %v1317_v27 = vld [vmem:[%s1276_s24 + $0x8] sm:$0xff]  ;;  %v1320_v31 = vld [vmem:[%s1276_s24 + $0x10] sm:$0xff] }
  0x78   : > { %v320_v24 = vsub.f32 0.0, %v312_v16  ;;  %v321_v25 = vsub.f32 0.0, %v313_v17  ;;  %v323_v26 = vmul.f32 1.442695, %v315_v14  ;;  %v322_v28 = vsub.f32 0.0, %v314_v18  ;;  %v1323_v32 = vld [vmem:[%s1276_s24 + $0x18] sm:$0xff] }
  0x79   : > { %v325_v29 = vmul.f32 1.442695, %v316_v19  ;;  %v327_v30 = vmul.f32 1.442695, %v317_v20  ;;  %v329_v33 = vmul.f32 1.442695, %v318_v21  ;;  %v276_v41 = vcvt.s32.f32 %v1317_v27 }
  0x7a   : > { %798 = vpow2.f32 %v323_v26  ;;  %v331_v34 = vmul.f32 1.442695, %v319_v23  ;;  %v1326_v35 = vld [vmem:[%s1276_s24 + $0x20] sm:$0xff]  ;;  %v1329_v36 = vld [vmem:[%s1276_s24 + $0x28] sm:$0xff]  ;;  %v1332_v37 = vld [vmem:[%s1276_s24 + $0x30] sm:$0xff]  ;;  %v277_v43 = vcvt.s32.f32 %v1320_v31  ;;  %v278_v44 = vcvt.s32.f32 %v1323_v32  ;;  %s527_s18 = scalar_lea.sflag [#allocation4], %s237_s0 }
  0x7b   : > { %800 = vpow2.f32 %v325_v29  ;;  %v333_v38 = vmul.f32 1.442695, %v320_v24  ;;  %v1335_v39 = vld [vmem:[%s1276_s24 + $0x38] sm:$0xff]  ;;  %v335_v42 = vmul.f32 1.442695, %v321_v25  ;;  %v279_v46 = vcvt.s32.f32 %v1326_v35  ;;  %s906_s22 = scalar_lea.vmem %s1534_s3, 32 }
  0x7c   : > { %802 = vpow2.f32 %v327_v30  ;;  %v337_v45 = vmul.f32 1.442695, %v322_v28  ;;  %v280_v47 = vcvt.s32.f32 %v1329_v36  ;;  %v281_v48 = vcvt.s32.f32 %v1332_v37  ;;  %p907_p8 = scmp.ne.s32.totalorder %s1534_s3, %s906_s22  ;;  %p1626_p11 = scmp.ne.s32.totalorder %s1616_s8, 0 }
  0x7d   : > { %804 = vpow2.f32 %v329_v33  ;;  %v1608_v49 = vcvt.s32.f32 %v1335_v39  ;;  %vm283_vm1 = vcmp.gt.f32.partialorder %v275_v40, 2.0  ;;  %vm284_vm2 = vcmp.gt.f32.partialorder %v276_v41, 2.0  ;;  %s1041_s16 = smov [#allocation7]  }
  0x7e   : > { %806 = vpow2.f32 %v331_v34  ;;  %vm285_vm3 = vcmp.gt.f32.partialorder %v277_v43, 2.0  ;;  %vm286_vm4 = vcmp.gt.f32.partialorder %v278_v44, 2.0  ;;  %vm287_vm5 = vcmp.gt.f32.partialorder %v279_v46, 2.0  ;;  %p908_p4 = pnand %p907_p8, %p1626_p11  ;;  %s910_s25 = sshll.u32 %s1041_s16, 4  ;;  %s911_s25 = int_to_ptr.vmem [resolvable:$false] %s910_s25 }
  0x7f   : > { %808 = vpow2.f32 %v333_v38  ;;  %vm288_vm6 = vcmp.gt.f32.partialorder %v280_v47, 2.0  ;;  %vm289_vm7 = vcmp.gt.f32.partialorder %v281_v48, 2.0  ;;  %vm290_vm8 = vcmp.gt.f32.partialorder %v1608_v49, 2.0  ;;  %s912_s23 = scalar_lea.vmem %s911_s25, 64  ;;  %p913_p13 = scmp.lt.s32.totalorder %s1534_s3, %s911_s25 }
  0x80   : > { %810 = vpow2.f32 %v335_v42  ;;  %v668_v51 = vsel %vm283_vm1, 1.0, %v1039_v50  ;;  %v669_v54 = vsel %vm284_vm2, 1.0, %v1039_v50  ;;  %v670_v55 = vsel %vm285_vm3, 1.0, %v1039_v50  ;;  %p909_p12 = pneg %p908_p4  ;;  %p914_p2 = scmp.lt.s32.totalorder %s912_s23, %s906_s22 }
  0x81   : > { %812 = vpow2.f32 %v337_v45  ;;  %v671_v56 = vsel %vm286_vm4, 1.0, %v1039_v50  ;;  %v380_v57 = vmax.f32 %v1291_v3, 0.0  ;;  %v672_v59 = vsel %vm287_vm5, 1.0, %v1039_v50 }
  0x82   : > { %v673_v60 = vsel %vm288_vm6, 1.0, %v1039_v50  ;;  %v674_v61 = vsel %vm289_vm7, 1.0, %v1039_v50  ;;  %v675_v0 = vsel %vm290_vm8, 1.0, %v1039_v50  ;;  %v381_v6 = vmax.f32 %v1293_v4, 0.0  ;;  %p915_p3 = por %p914_p2, %p913_p13 }
  0x83   : > { %v387_v10 = vmul.f32 %v668_v51, %v1289_v2  ;;  %v382_v14 = vmax.f32 %v1295_v5, 0.0  ;;  %v383_v15 = vmax.f32 %v1298_v7, 0.0  ;;  %v384_v18 = vmax.f32 %v1300_v8, 0.0 }
  0x84   : > { %v1362_v53 = vpop.eup %798  ;;  %v385_v19 = vmax.f32 %v1302_v9, 0.0  ;;  %v386_v23 = vmax.f32 %v1307_v13, 0.0  ;;  %v388_v24 = vmul.f32 %v669_v54, %v1291_v3  ;;  %v389_v28 = vmul.f32 %v670_v55, %v1293_v4  ;;  %p916_p0 = pnand %p915_p3, %p909_p12 }
  0x85   : > { %v1365_v58 = vpop.eup %800  ;;  %v347_v62 = vadd.f32 1.0, %v1362_v53  ;;  %v390_v29 = vmul.f32 %v671_v56, %v1295_v5  ;;  %v391_v34 = vmul.f32 %v672_v59, %v1298_v7  ;;  %v392_v38 = vmul.f32 %v673_v60, %v1300_v8 }
  0x86   : > { %v1368_v63 = vpop.eup %802  ;;  %v348_v1 = vadd.f32 1.0, %v1365_v58  ;;  %v393_v45 = vmul.f32 %v674_v61, %v1302_v9  ;;  %v394_v50 = vmul.f32 %v675_v0, %v1307_v13  ;;  %v1401_v51 = vsub.f32 %v379_v52, %v387_v10 }
  0x87   : > { %v1373_v11 = vpop.eup %804  ;;  %v349_v12 = vadd.f32 1.0, %v1368_v63  ;;  %814 = vlog2.f32 %v347_v62  ;;  %v1403_v54 = vsub.f32 %v380_v57, %v388_v24  ;;  %v1405_v55 = vsub.f32 %v381_v6, %v389_v28 }
  0x88   : > { %v1378_v16 = vpop.eup %806  ;;  %v350_v17 = vadd.f32 1.0, %v1373_v11  ;;  %816 = vlog2.f32 %v348_v1  ;;  %v1407_v56 = vsub.f32 %v382_v14, %v390_v29  ;;  %v1409_v59 = vsub.f32 %v383_v15, %v391_v34 }
  0x89   : > { %v1383_v20 = vpop.eup %808  ;;  %v351_v21 = vadd.f32 1.0, %v1378_v16  ;;  %818 = vlog2.f32 %v349_v12  ;;  %v1411_v60 = vsub.f32 %v384_v18, %v392_v38  ;;  %v1413_v49 = vsub.f32 %v385_v19, %v393_v45 }
  0x8a   : > { %v1388_v25 = vpop.eup %810  ;;  %v352_v26 = vadd.f32 1.0, %v1383_v20  ;;  %820 = vlog2.f32 %v350_v17  ;;  %v1415_v61 = vsub.f32 %v386_v23, %v394_v50  ;;  %vm419_vm9 = vcmp.ge.f32.partialorder %v1289_v2, 0.0 }
  0x8b   : > { %v1393_v30 = vpop.eup %812  ;;  %v353_v33 = vadd.f32 1.0, %v1388_v25  ;;  %822 = vlog2.f32 %v351_v21  ;;  %v1420_v52 = vmul.f32 0.25, %v275_v40  ;;  %v1424_v57 = vmul.f32 0.25, %v276_v41 }
  0x8c   : > { %v354_v42 = vadd.f32 1.0, %v1393_v30  ;;  %824 = vlog2.f32 %v352_v26  ;;  %vm339_vm10 = vcmp.lt.f32.partialorder %v1362_v53, 1e-06  ;;  %vm420_vm11 = vcmp.ge.f32.partialorder %v1291_v3, 0.0 }
  0x8d   : > { %826 = vlog2.f32 %v353_v33  ;;  %v1438_v22 = vmul.f32 0.25, %v279_v46  ;;  %vm340_vm12 = vcmp.lt.f32.partialorder %v1365_v58, 1e-06  ;;  %vm421_vm13 = vcmp.ge.f32.partialorder %v1293_v4, 0.0 }
  0x8e   : > { %828 = vlog2.f32 %v354_v42  ;;  %vm422_vm14 = vcmp.ge.f32.partialorder %v1295_v5, 0.0  ;;  %v1445_v32 = vmul.f32 0.25, %v280_v47  ;;  %v1449_v35 = vmul.f32 0.25, %v281_v48 }
  0x8f   : > { %830 = vrcp.f32 %v347_v62  ;;  %v1428_v62 = vmul.f32 0.25, %v277_v43  ;;  %vm341_vm15 = vcmp.lt.f32.partialorder %v1368_v63, 1e-06  ;;  %vm342_vm0 = vcmp.lt.f32.partialorder %v1373_v11, 1e-06 }
  0x90   : > { %832 = vrcp.f32 %v348_v1  ;;  %v1434_v1 = vmul.f32 0.25, %v278_v44  ;;  %vm423_vm1 = vcmp.ge.f32.partialorder %v1298_v7, 0.0  ;;  %vm343_vm2 = vcmp.lt.f32.partialorder %v1378_v16, 1e-06 }
  0x91   : > { %v815_v0 = vpop.eup %814  ;;  %834 = vrcp.f32 %v349_v12  ;;  %vm344_vm3 = vcmp.lt.f32.partialorder %v1383_v20, 1e-06  ;;  %vm424_vm4 = vcmp.ge.f32.partialorder %v1300_v8, 0.0  ;;  %vm345_vm5 = vcmp.lt.f32.partialorder %v1388_v25, 1e-06 }
  0x92   : > { %v817_v6 = vpop.eup %816  ;;  %836 = vrcp.f32 %v350_v17  ;;  %v356_v31 = vmul.f32 0.6931472, %v815_v0  ;;  %vm425_vm6 = vcmp.ge.f32.partialorder %v1302_v9, 0.0  ;;  %vm346_vm7 = vcmp.lt.f32.partialorder %v1393_v30, 1e-06 }
  0x93   : > { %v819_v27 = vpop.eup %818  ;;  %v358_v40 = vmul.f32 0.6931472, %v817_v6  ;;  %838 = vrcp.f32 %v351_v21  ;;  %vm426_vm8 = vcmp.ge.f32.partialorder %v1307_v13, 0.0 }
  0x94   : > { %v821_v41 = vpop.eup %820  ;;  %v360_v43 = vmul.f32 0.6931472, %v819_v27  ;;  %840 = vrcp.f32 %v352_v26  ;;  %v371_v48 = vsel %vm339_vm10, %v1362_v53, %v356_v31  ;;  %v1625_v26 = vcvt.s32.f32 %v1335_v39 }
  0x95   : > { %v823_v44 = vpop.eup %822  ;;  %v362_v46 = vmul.f32 0.6931472, %v821_v41  ;;  %842 = vrcp.f32 %v353_v33  ;;  %v372_v12 = vsel %vm340_vm12, %v1365_v58, %v358_v40  ;;  %v403_v34 = vadd.f32 %v1401_v51, %v371_v48 }
  0x96   : > { %v825_v10 = vpop.eup %824  ;;  %v364_v36 = vmul.f32 0.6931472, %v823_v44  ;;  %844 = vrcp.f32 %v354_v42  ;;  %v373_v17 = vsel %vm341_vm15, %v1368_v63, %v360_v43  ;;  %v450_v28 = vmul.f32 0.25, %v1625_v26 }
  0x97   : > { %v827_v37 = vpop.eup %826  ;;  %v366_v47 = vmul.f32 0.6931472, %v825_v10  ;;  %v374_v18 = vsel %vm342_vm0, %v1373_v11, %v362_v46  ;;  %v404_v38 = vadd.f32 %v1403_v54, %v372_v12  ;;  %v405_v0 = vadd.f32 %v1405_v55, %v373_v17 }
  0x98   : > { %v829_v14 = vpop.eup %828  ;;  %v368_v15 = vmul.f32 0.6931472, %v827_v37  ;;  %v375_v23 = vsel %vm343_vm2, %v1378_v16, %v364_v36  ;;  %v406_v39 = vadd.f32 %v1407_v56, %v374_v18 }
  0x99   : > { %v831_v19 = vpop.eup %830  ;;  %v370_v21 = vmul.f32 0.6931472, %v829_v14  ;;  %v376_v24 = vsel %vm344_vm3, %v1383_v20, %v366_v47  ;;  %v407_v31 = vadd.f32 %v1409_v59, %v375_v23 }
  0x9a   : > { %v833_v29 = vpop.eup %832  ;;  %v377_v33 = vsel %vm345_vm5, %v1388_v25, %v368_v15  ;;  %v427_v42 = vmul.f32 %v831_v19, %v1362_v53  ;;  %v408_v51 = vadd.f32 %v1411_v60, %v376_v24 }
  0x9b   : > { %v835_v45 = vpop.eup %834  ;;  %v378_v50 = vsel %vm346_vm7, %v1393_v30, %v370_v21  ;;  %v428_v6 = vmul.f32 %v833_v29, %v1365_v58  ;;  %v409_v41 = vadd.f32 %v1413_v49, %v377_v33 }
  0x9c   : > { %v837_v27 = vpop.eup %836  ;;  %v429_v54 = vmul.f32 %v835_v45, %v1368_v63  ;;  %v435_v53 = vsel %vm419_vm9, %v831_v19, %v427_v42  ;;  %v410_v59 = vadd.f32 %v1415_v61, %v378_v50 }
  0x9d   : > { %v839_v40 = vpop.eup %838  ;;  %v430_v43 = vmul.f32 %v837_v27, %v1373_v11  ;;  %v436_v55 = vsel %vm420_vm11, %v833_v29, %v428_v6  ;;  %v451_v58 = vsub.f32 %v435_v53, %v1420_v52 }
  0x9e   : > { %v841_v56 = vpop.eup %840  ;;  %v431_v60 = vmul.f32 %v839_v40, %v1378_v16  ;;  %v437_v63 = vsel %vm421_vm13, %v835_v45, %v429_v54  ;;  %v452_v2 = vsub.f32 %v436_v55, %v1424_v57 }
  0x9f   : > { %v843_v44 = vpop.eup %842  ;;  %v432_v49 = vmul.f32 %v841_v56, %v1383_v20  ;;  %v438_v11 = vsel %vm422_vm14, %v837_v27, %v430_v43  ;;  %v453_v3 = vsub.f32 %v437_v63, %v1428_v62  ;;  %v459_v46 = vmul.f32 %v451_v58, %v451_v58 }
  0xa0   : > { %v845_v52 = vpop.eup %844  ;;  %v433_v10 = vmul.f32 %v843_v44, %v1388_v25  ;;  %v439_v16 = vsel %vm423_vm1, %v839_v40, %v431_v60  ;;  %v454_v4 = vsub.f32 %v438_v11, %v1434_v1  ;;  %v460_v61 = vmul.f32 %v452_v2, %v452_v2  ;;  %v483_v11 = vld [vmem:[%s1285_s28] sm:$0x3] }
  0xa1   : > { %v434_v57 = vmul.f32 %v845_v52, %v1393_v30  ;;  %v440_v20 = vsel %vm424_vm4, %v841_v56, %v432_v49  ;;  %v455_v5 = vsub.f32 %v439_v16, %v1438_v22  ;;  %v461_v36 = vmul.f32 %v453_v3, %v453_v3 }
  0xa2   : > { %v441_v62 = vsel %vm425_vm6, %v843_v44, %v433_v10  ;;  %v456_v37 = vsub.f32 %v440_v20, %v1445_v32  ;;  %v462_v25 = vmul.f32 %v454_v4, %v454_v4  ;;  %v467_v47 = vmul.f32 0.5, %v459_v46 }
  0xa3   : > { %v442_v7 = vsel %vm426_vm8, %v845_v52, %v434_v57  ;;  %v457_v1 = vsub.f32 %v441_v62, %v1449_v35  ;;  %v463_v48 = vmul.f32 %v455_v5, %v455_v5  ;;  %v468_v30 = vmul.f32 0.5, %v460_v61 }
  0xa4   : > { %v458_v12 = vsub.f32 %v442_v7, %v450_v28  ;;  %v464_v8 = vmul.f32 %v456_v37, %v456_v37  ;;  %v469_v14 = vmul.f32 0.5, %v461_v36  ;;  %v470_v15 = vmul.f32 0.5, %v462_v25 }
  0xa5   : > { %v465_v22 = vmul.f32 %v457_v1, %v457_v1  ;;  %v471_v17 = vmul.f32 0.5, %v463_v48  ;;  %v475_v18 = vadd.f32 %v467_v47, %v403_v34  ;;  %v476_v9 = vadd.f32 %v468_v30, %v404_v38 }
  0xa6   : > { %v466_v19 = vmul.f32 %v458_v12, %v458_v12  ;;  %v472_v21 = vmul.f32 0.5, %v464_v8  ;;  %v477_v32 = vadd.f32 %v469_v14, %v405_v0  ;;  %v478_v23 = vadd.f32 %v470_v15, %v406_v39 }
  0xa7   : > { %v473_v24 = vmul.f32 0.5, %v465_v22  ;;  %v479_v26 = vadd.f32 %v471_v17, %v407_v31  ;;  %v1040_v40 = vmov 1966171168   ;;  %v508_v39 = vlaneseq }
  0xa8   : > { %v474_v13 = vmul.f32 0.5, %v466_v19  ;;  %v480_v29 = vadd.f32 %v472_v21, %v408_v51  ;;  %v484_v33 = vadd.f32 %v477_v32, %v475_v18  ;;  %v493_v35 = vadd.f32 %v478_v23, %v476_v9 }
  0xa9   : > { %v481_v42 = vadd.f32 %v473_v24, %v409_v41  ;;  %v506_v0 = vunpack.c.l.s4 %v1040_v40  ;;  %v509_v58 = vshrl.u32 %v508_v39, 7  ;;  %vm523_vm9 = vcmp.lt.s32.totalorder %v508_v39, 256 }
  0xaa   : > { %v482_v45 = vadd.f32 %v474_v13, %v410_v59  ;;  %v485_v28 = vadd.f32 %v484_v33, %v479_v26  ;;  %v494_v50 = vadd.f32 %v493_v35, %v480_v29 }
  0xab   : > { %v507_v41 = vunpack.c.0.s8 %v506_v0 }
  0xac   : > { %v486_v6 = vadd.f32 %v485_v28, %v481_v42  ;;  %v495_v27 = vadd.f32 %v494_v50, %v482_v45 }
  0xad   : > { %v510_v2 = vsub.s32 %v507_v41, %v509_v58 }
  0xae   : > { %v487_v54 = vrot.slane %v486_v6, 4  ;;  %v496_v53 = vrot.slane %v495_v27, 4 }
  0xb0   : > { %v488_v34 = vadd.f32 %v487_v54, %v486_v6  ;;  %v497_v38 = vadd.f32 %v496_v53, %v495_v27 }
  0xb2   : > { %v489_v31 = vrot.slane %v488_v34, 2  ;;  %v498_v51 = vrot.slane %v497_v38, 2 }
  0xb4   : > { %v490_v43 = vadd.f32 %v489_v31, %v488_v34  ;;  %v499_v55 = vadd.f32 %v498_v51, %v497_v38 }
  0xb6   : > { %v491_v56 = vrot.slane %v490_v43, 1  ;;  %v500_v59 = vrot.slane %v499_v55, 1 }
  0xb8   : > { %v492_v60 = vadd.f32 %v491_v56, %v490_v43  ;;  %v501_v63 = vadd.f32 %v500_v59, %v499_v55 }
  0xba   : > { %v504_v44 = vcombine.low %v492_v60, %v501_v63 }
  0xbc   : > { %v511_v49 = vrot.slane %v504_v44, %v510_v2 }
  0xbe   : > { %v518_v3 = vrot.slane %v511_v49, %v510_v2 }
  0xc0   : > { %v520_v46 = vadd.f32 %v518_v3, %v483_v11 }
  0xc2   : > { %525 = vst.msk [vmem:[%s1285_s28] sm:$0x3] %vm523_vm9, %v520_v46 }
  0xc3   : > { %919 = shalt.err (!%p916_p0)
}
  0xc4   : > { %s920_s4 = scalar_lea.hbm %s1532_s29, 32  ;;  %s924_s20 = scalar_lea.hbm %s1599_s2, 64 }
  0xc5   : > { %p921_p1 = scmp.ne.s32.totalorder %s1532_s29, %s920_s4  ;;  %p925_p5 = scmp.lt.u32.totalorder %s1532_s29, %s1599_s2 }
  0xc6   : > { %p926_p9 = scmp.lt.u32.totalorder %s924_s20, %s920_s4  ;;  %p928_p8 = scmp.lt.u32.totalorder %s920_s4, %s1532_s29 }
  0xc7   : > { %p922_p7 = pnand %p921_p1, %p1626_p11 }
  0xc8   : > { %p927_p6 = por %p926_p9, %p925_p5 }
  0xc9   : > { %p923_p10 = pneg %p922_p7 }
  0xca   : > { %p929_p4 = por %p928_p8, %p927_p6 }
  0xcc   : > { %p930_p12 = pnand %p929_p4, %p923_p10 }
  0xce   : > { %933 = shalt.err (!%p930_p12)
}
  0xcf   : > { %690 = dma.vmem_to_hbm [thread:$0]  (%p1626_p11), %s1534_s3, 32, %s1532_s29, %s527_s18  }
  0xd0 PF: > { %p704_p13 = scmp.ge.s32.totalorder %s1032_s19, 2  ;;  %s553_s0 = sand.u32 1, %s992_s9  }
  0xd1   : > { %p1627_p2 = scmp.ne.s32.totalorder %s1617_s12, 0  ;;  %s554_s17 = scalar_lea.sflag [#allocation4], %s553_s0 }
  0xd3   : > { %p700_p3 = pnand %p704_p13, %p1627_p2 }
  0xd5   : > { %987 = dma.done.wait (!%p700_p3), %s554_s17, 32  }
  0xd6   : > { %989 = vsyncadd (!%p700_p3), %s554_s17, 4294967264  ;;  %s21_s19 = sadd.s32 1, %s1032_s19   ;;  %s1628_s15 = sld [smem:[#allocation11_spill]] }
  0xd7   : > { %p18_p0 = scmp.ge.s32.totalorder %s21_s19, 6   ;;  %s1629_s16 = sld [smem:[#allocation12_spill]] }
  0xd8   : > { %s1630_s17 = sld [smem:[#allocation13_spill]]  ;;  %s1631_s18 = sld [smem:[#allocation14_spill]] }
  0xd9   : > { %s1632_s9 = smov %s996_s10  ;;  %s1633_s10 = smov %s1000_s11 }
  0xda   : > { %s1634_s11 = smov %s1147_s5  ;;  %s1635_s12 = smov %s1008_s13 }
  0xdb   : > { %s1636_s13 = smov %s1012_s14  ;;  %s1637_s14 = smov %s1159_s7 }
  0xdc   :  { %20 = sbr.rel (!%p18_p0) target bundleno = 13 (0xd), region = 90 }
  0xe3   :  { %559 = vsyncpa [#allocation3], 1 }
  0xe4   :  { %561 = vsyncpa [#allocation3 + $0x1], 1 }
  0xe5   :  { %562 = vsyncpa [#allocation6], 1 }
  0xe6   :  { %564 = vsyncpa [#allocation6 + $0x1], 1 }
  0xe7   :  { %565 = vsyncpa [#allocation4], 1 }
  0xe8   :  { %567 = vsyncpa [#allocation4 + $0x1], 1 }

</bundles_post_ra>
